<compile_context>
chip_gen: v6e
topology: v6e:2x2x1
jax: 0.10.0
libtpu: 0.0.40
codegen_flags: <defaults>
</compile_context>

<pallas_src>
import functools

import jax
import jax.numpy as jnp
from jax import lax
from jax.experimental import pallas as pl
from jax.experimental.pallas import tpu as pltpu


def _round_up(x, m):
    return ((x + m - 1) // m) * m


def _batch_tile_cap(in_nl, L, max_hidden, x_nl_bytes, x_l_bytes,
                    budget_bytes=20 << 20, bt_max=8192):
    """Largest batch tile (multiple of 128) whose streamed VMEM footprint —
    double-buffered, lane-padded x tiles, double-buffered (1, Bt) output tile,
    and a few live f32 activation slabs — fits `budget_bytes`.  20 MiB stays
    under the 32 MiB scoped-VMEM default on every generation (v7x physical
    VMEM is only 64 MiB, so be conservative)."""
    lane = lambda n: _round_up(max(int(n), 1), 128)
    per_col = (2 * lane(in_nl) * x_nl_bytes        # x_nl tile, double-buffered
               + 2 * lane(L) * x_l_bytes           # x_l tile, double-buffered
               + 2 * 8 * 4                         # (1, Bt) f32 out tile, x2
               + 3 * max(int(max_hidden), 8) * 4)  # live f32 activation slabs
    cap = (budget_bytes // per_col) // 128 * 128
    return int(max(128, min(bt_max, cap)))


def _make_kernel(n_mm, matmul_dtype, epilogue_dtype):
    """n_mm (Linear + Sigmoid) MXU layers, a final hidden->1 (Linear + Sigmoid)
    done as a VPU mul + sublane reduce, then the folded concat layer.
    All activations live lane-dense as (features, batch_tile)."""

    def sigmoid(z):
        # Single EUP push per element (tanh) vs exp + divide for jax.nn.sigmoid.
        return 0.5 * (jnp.tanh(0.5 * z) + 1.0)

    def kernel(scalars_ref, x_nl_ref, x_l_ref, *rest):
        # rest = (w_0, b_0, ..., w_{n_mm-1}, b_{n_mm-1},
        #         w_last_col, wc_l_pad, out_ref)
        o_ref = rest[-1]
        b_last = scalars_ref[0]     # final MLP-layer bias
        wc_mlp = scalars_ref[1]     # concat-layer weight on the MLP output
        bc = scalars_ref[2]         # concat-layer bias

        # First layer: contract the natural-layout (Bt, In) x tile against
        # w0 (out0, In) on both last axes -> lane-dense (out0, Bt).  The MXU
        # consumes the transposed operand; no wrapper-side transpose pass.
        z = lax.dot_general(rest[0][...], x_nl_ref[...].astype(matmul_dtype),
                            (((1,), (1,)), ((), ())),
                            preferred_element_type=jnp.float32) + rest[1][...]
        act = sigmoid(z).astype(epilogue_dtype)

        for i in range(1, n_mm):
            w = rest[2 * i][...]                     # (out_i, in_i), matmul_dtype
            b = rest[2 * i + 1][...]                 # (out_i, 1), f32
            z = jnp.dot(w, act.astype(matmul_dtype),
                        preferred_element_type=jnp.float32) + b
            act = sigmoid(z).astype(epilogue_dtype)  # (out_i, Bt)

        w_last = rest[2 * n_mm][...]                 # (H_last, 1), f32
        wc_l = rest[2 * n_mm + 1][...]               # (8, L), f32 (row 0 real)

        # Final hidden->1 Linear + Sigmoid as a VPU broadcast-mul + sublane
        # reduce (an N=1 MXU matmul would be <1% utilized).
        mlp_out = sigmoid(
            jnp.sum(w_last * act.astype(jnp.float32), axis=0, keepdims=True)
            + b_last)                                               # (1, Bt)

        # Concat layer, x_l part: (8, L) x (Bt, L)^T on the (idle) MXU gives a
        # lane-dense (8, Bt); only row 0 carries real data.
        xl = lax.dot_general(wc_l, x_l_ref[...].astype(jnp.float32),
                             (((1,), (1,)), ((), ())),
                             preferred_element_type=jnp.float32)[0:1, :]

        # out = wc[0]*mlp_out + x_l @ wc[1:] + bc   (concat fold), (1, Bt).
        o_ref[...] = (wc_mlp * mlp_out + xl + bc).astype(o_ref.dtype)

    return kernel


def init_params(key, input_size_nl, hidden_sizes, input_size_l,
                dtype=jnp.float32):
    """PyTorch-layout params: weights (out, in), biases (out,)."""
    dims = [input_size_nl] + list(hidden_sizes) + [1]
    weights, biases = [], []
    for i in range(len(dims) - 1):
        fan_in, fan_out = dims[i], dims[i + 1]
        key, kw, kb = jax.random.split(key, 3)
        bound = 1.0 / (fan_in ** 0.5)
        weights.append(jax.random.uniform(kw, (fan_out, fan_in), dtype,
                                          minval=-bound, maxval=bound))
        biases.append(jax.random.uniform(kb, (fan_out,), dtype,
                                         minval=-bound, maxval=bound))
    key, kw, kb = jax.random.split(key, 3)
    bound = 1.0 / ((input_size_l + 1) ** 0.5)
    wc = jax.random.uniform(kw, (1, input_size_l + 1), dtype,
                            minval=-bound, maxval=bound)
    bc = jax.random.uniform(kb, (1,), dtype, minval=-bound, maxval=bound)
    return {"weights": weights, "biases": biases, "wc": wc, "bc": bc}


@functools.partial(jax.jit, static_argnames=("matmul_dtype", "epilogue_dtype"))
def mlp_ann_s_forward(x_nl, x_l, params, matmul_dtype=jnp.bfloat16,
                      epilogue_dtype=jnp.float32):
    """Forward pass of MLP_ANN_S.

    matmul_dtype:   MXU operand dtype for the Linear layers (bf16 is MXU-native
                    on v5e/v6e/v7x; pass jnp.float32 for an exact-f32 path).
                    Accumulation is always f32.
    epilogue_dtype: dtype of the activations between layers.  Keep f32 on v5e
                    (no bf16 VPU/EUP); bf16 halves EUP/VPU work on v6e/v7x.
    """
    weights = params["weights"]     # list of (out, in)  (PyTorch layout)
    biases = params["biases"]       # list of (out,)
    wc = params["wc"]               # (1, L + 1)
    bc = params["bc"]               # (1,)

    B, in_nl = x_nl.shape
    L = x_l.shape[1]
    n_mm = len(weights) - 1                       # layers run on the MXU
    h_last = weights[-1].shape[1]                 # fan-in of the hidden->1 layer
    hidden_max = max(w.shape[0] for w in weights)

    # ---- batch tiling: the batch sits on the 128-lane axis everywhere ------
    bt_cap = _batch_tile_cap(in_nl, L, hidden_max,
                             x_nl.dtype.itemsize, x_l.dtype.itemsize)
    if B < 256:
        # Single tile; block dims equal the full array dims, so the (8,128)
        # divisibility rule is satisfied trivially and nothing is padded.
        Bt, grid_n = B, 1
    else:
        # >= 2 (even) grid steps so both v7x TensorCores get work; no padding —
        # a ragged last block is handled by the Pallas pipeline and the
        # out-of-range batch columns never touch valid output columns.
        grid_n = max(2, pl.cdiv(B, bt_cap))
        grid_n += grid_n % 2
        Bt = _round_up(pl.cdiv(B, grid_n), 128)
        grid_n = pl.cdiv(B, Bt)

    # Tiny scalars travel through SMEM (no padded (8,128) VMEM tiles for them).
    scalars = jnp.stack([biases[-1][0], wc[0, 0], bc[0]]).astype(jnp.float32)

    def resident_spec(shape):
        # Whole-array block, constant index_map -> DMAed once, resident in VMEM
        # across the entire batch grid.
        return pl.BlockSpec(shape, lambda i: (0,) * len(shape))

    flat_inputs = [scalars, x_nl, x_l]
    in_specs = [
        pl.BlockSpec(memory_space=pltpu.MemorySpace.SMEM),
        pl.BlockSpec((Bt, in_nl), lambda i: (i, 0)),
        pl.BlockSpec((Bt, L), lambda i: (i, 0)),
    ]

    # Pre-cast resident operands once in the wrapper (free), not per grid step.
    for w, b in zip(weights[:-1], biases[:-1]):
        w_c = w.astype(matmul_dtype)
        b_col = b.reshape(-1, 1).astype(jnp.float32)
        flat_inputs += [w_c, b_col]
        in_specs += [resident_spec(w_c.shape), resident_spec(b_col.shape)]

    # Final hidden->1 weights as an f32 column (VPU reduce path); the x_l part
    # of the concat layer as an 8-row slab (row 0 real) for a sublane-native
    # lhs in the tiny MXU dot.
    w_last_col = weights[-1].reshape(h_last, 1).astype(jnp.float32)
    wc_l_pad = jnp.pad(wc[:, 1:], ((0, 7), (0, 0))).astype(jnp.float32)   # (8, L)
    flat_inputs += [w_last_col, wc_l_pad]
    in_specs += [resident_spec(w_last_col.shape), resident_spec(wc_l_pad.shape)]

    # Advisory cost hint for the XLA scheduler.
    flops = 2 * B * (sum(w.shape[0] * w.shape[1] for w in weights) + (L + 1))
    transcendentals = B * sum(w.shape[0] for w in weights)
    bytes_accessed = (x_nl.size * x_nl.dtype.itemsize
                      + x_l.size * x_l.dtype.itemsize
                      + sum(w.size + b.size for w, b in zip(weights, biases)) * 4
                      + (wc.size + bc.size) * 4
                      + B * 4)

    out_slab = pl.pallas_call(
        _make_kernel(n_mm, matmul_dtype, epilogue_dtype),
        out_shape=jax.ShapeDtypeStruct((1, B), x_nl.dtype),
        grid=(grid_n,),
        in_specs=in_specs,
        # Lane-dense output slab: batch on the 128-lane axis -> unmasked stores.
        out_specs=pl.BlockSpec((1, Bt), lambda i: (0, i)),
        compiler_params=pltpu.CompilerParams(
            # "parallel" lets the batch axis shard across v7x's two TCs
            # (no-op on single-TC v5e/v6e).
            dimension_semantics=("parallel",),
            vmem_limit_bytes=32 * 1024 * 1024),
        cost_estimate=pl.CostEstimate(
            flops=flops, transcendentals=transcendentals,
            bytes_accessed=bytes_accessed),
    )(*flat_inputs)

    # (1, B) -> (B, 1) is a pure reshape (same linear order): no transpose pass.
    return out_slab.reshape(B, 1)


def _reference_forward(x_nl, x_l, params):
    """Pure-JAX reference mirroring the PyTorch forward exactly."""
    out = x_nl
    for w, b in zip(params["weights"], params["biases"]):
        out = jax.nn.sigmoid(out @ w.T + b)
    out = jnp.concatenate([out, x_l], axis=1)
    return out @ params["wc"].T + params["bc"]


if __name__ == "__main__":
    # Shapes consistent with the module's forward:
    #   x_nl: (batch, input_size_nl), x_l: (batch, input_size_l)
    input_size_nl = 16
    hidden_sizes = [32, 16]
    input_size_l = 4

    key = jax.random.PRNGKey(0)
    k_params, k_xnl, k_xl, k_xnl2, k_xl2 = jax.random.split(key, 5)
    params = init_params(k_params, input_size_nl, hidden_sizes, input_size_l)

    # ---- small single-tile batch -------------------------------------------
    batch = 8
    x_nl = jax.random.normal(k_xnl, (batch, input_size_nl), jnp.float32)
    x_l = jax.random.normal(k_xl, (batch, input_size_l), jnp.float32)
    ref = _reference_forward(x_nl, x_l, params)

    # Exact f32 MXU path: tight tolerance.
    out_f32 = jax.block_until_ready(
        mlp_ann_s_forward(x_nl, x_l, params, matmul_dtype=jnp.float32))
    assert out_f32.shape == (batch, 1), out_f32.shape
    assert jnp.allclose(out_f32, ref, atol=2e-5, rtol=2e-5), (out_f32, ref)

    # Default fast path (bf16 MXU operands): looser tolerance (~1e-3 expected).
    out_bf16 = jax.block_until_ready(mlp_ann_s_forward(x_nl, x_l, params))
    assert out_bf16.shape == (batch, 1), out_bf16.shape
    assert jnp.allclose(out_bf16, ref, atol=5e-2, rtol=5e-2), (out_bf16, ref)

    # ---- multi-tile batch (exercises the streaming grid / both v7x TCs) -----
    batch2 = 512
    x_nl2 = jax.random.normal(k_xnl2, (batch2, input_size_nl), jnp.float32)
    x_l2 = jax.random.normal(k_xl2, (batch2, input_size_l), jnp.float32)
    ref2 = _reference_forward(x_nl2, x_l2, params)
    out2 = jax.block_until_ready(
        mlp_ann_s_forward(x_nl2, x_l2, params, matmul_dtype=jnp.float32))
    assert out2.shape == (batch2, 1), out2.shape
    assert jnp.allclose(out2, ref2, atol=2e-5, rtol=2e-5), (out2, ref2)

    print("KERNEL_OK")
</pallas_src>

<mosaic_0001>
module attributes {stable_mosaic.version = 11 : i64} {
  func.func @kernel(%arg0: i32, %arg1: memref<3xf32, #tpu.memory_space<smem>>, %arg2: memref<8x16xf32, #tpu.memory_space<vmem>>, %arg3: memref<8x4xf32, #tpu.memory_space<vmem>>, %arg4: memref<32x16xf32, #tpu.memory_space<vmem>>, %arg5: memref<32x1xf32, #tpu.memory_space<vmem>>, %arg6: memref<16x32xf32, #tpu.memory_space<vmem>>, %arg7: memref<16x1xf32, #tpu.memory_space<vmem>>, %arg8: memref<16x1xf32, #tpu.memory_space<vmem>>, %arg9: memref<8x4xf32, #tpu.memory_space<vmem>>, %arg10: memref<1x8xf32, #tpu.memory_space<vmem>>) attributes {dimension_semantics = [#tpu.dimension_semantics<parallel>], iteration_bounds = array<i64: 1>, scalar_prefetch = 0 : i64, scratch_operands = 0 : i64, tpu.core_type = #tpu.core_type<tc>, window_params = [{transform_indices = @transform_0, window_bounds = array<i64: 3>}, {transform_indices = @transform_1, window_bounds = array<i64: 8, 16>}, {transform_indices = @transform_2, window_bounds = array<i64: 8, 4>}, {pipeline_mode = #tpu.pipeline_mode<synchronous>, transform_indices = @transform_3, window_bounds = array<i64: 32, 16>}, {pipeline_mode = #tpu.pipeline_mode<synchronous>, transform_indices = @transform_4, window_bounds = array<i64: 32, 1>}, {pipeline_mode = #tpu.pipeline_mode<synchronous>, transform_indices = @transform_5, window_bounds = array<i64: 16, 32>}, {pipeline_mode = #tpu.pipeline_mode<synchronous>, transform_indices = @transform_6, window_bounds = array<i64: 16, 1>}, {pipeline_mode = #tpu.pipeline_mode<synchronous>, transform_indices = @transform_7, window_bounds = array<i64: 16, 1>}, {pipeline_mode = #tpu.pipeline_mode<synchronous>, transform_indices = @transform_8, window_bounds = array<i64: 8, 4>}, {transform_indices = @transform_9, window_bounds = array<i64: 1, 8>}]} {
    %c0 = arith.constant 0 : index
    %0 = memref.load %arg1[%c0] : memref<3xf32, #tpu.memory_space<smem>>
    %c1 = arith.constant 1 : index
    %1 = memref.load %arg1[%c1] : memref<3xf32, #tpu.memory_space<smem>>
    %c2 = arith.constant 2 : index
    %2 = memref.load %arg1[%c2] : memref<3xf32, #tpu.memory_space<smem>>
    %c0_0 = arith.constant 0 : index
    %c0_1 = arith.constant 0 : index
    %3 = vector.load %arg4[%c0_0, %c0_1] : memref<32x16xf32, #tpu.memory_space<vmem>>, vector<32x16xf32>
    %c0_2 = arith.constant 0 : index
    %c0_3 = arith.constant 0 : index
    %4 = vector.load %arg2[%c0_2, %c0_3] : memref<8x16xf32, #tpu.memory_space<vmem>>, vector<8x16xf32>
    %cst = arith.constant dense<0.000000e+00> : vector<32x8xf32>
    %5 = tpu.matmul %3, %4, %cst {dimension_numbers = #tpu.dot_dimension_numbers<[1], [1], [0], [0], [0, 0, 1, 0], [], []>} : vector<32x16xf32>, vector<8x16xf32>, vector<32x8xf32> -> vector<32x8xf32>
    %c0_4 = arith.constant 0 : index
    %c0_5 = arith.constant 0 : index
    %6 = vector.load %arg5[%c0_4, %c0_5] : memref<32x1xf32, #tpu.memory_space<vmem>>, vector<32x1xf32>
    %7 = vector.broadcast %6 : vector<32x1xf32> to vector<32x8xf32>
    %8 = arith.addf %5, %7 : vector<32x8xf32>
    %cst_6 = arith.constant 5.000000e-01 : f32
    %9 = vector.broadcast %cst_6 : f32 to vector<32x8xf32>
    %10 = arith.mulf %9, %8 : vector<32x8xf32>
    %11 = math.tanh %10 : vector<32x8xf32>
    %cst_7 = arith.constant 1.000000e+00 : f32
    %12 = vector.broadcast %cst_7 : f32 to vector<32x8xf32>
    %13 = arith.addf %11, %12 : vector<32x8xf32>
    %cst_8 = arith.constant 5.000000e-01 : f32
    %14 = vector.broadcast %cst_8 : f32 to vector<32x8xf32>
    %15 = arith.mulf %14, %13 : vector<32x8xf32>
    %c0_9 = arith.constant 0 : index
    %c0_10 = arith.constant 0 : index
    %16 = vector.load %arg6[%c0_9, %c0_10] : memref<16x32xf32, #tpu.memory_space<vmem>>, vector<16x32xf32>
    %c0_11 = arith.constant 0 : index
    %c0_12 = arith.constant 0 : index
    %17 = vector.load %arg7[%c0_11, %c0_12] : memref<16x1xf32, #tpu.memory_space<vmem>>, vector<16x1xf32>
    %cst_13 = arith.constant dense<0.000000e+00> : vector<16x8xf32>
    %18 = tpu.matmul %16, %15, %cst_13 {dimension_numbers = #tpu.dot_dimension_numbers<[1], [0], [0], [1], [0, 0, 1, 1], [], []>} : vector<16x32xf32>, vector<32x8xf32>, vector<16x8xf32> -> vector<16x8xf32>
    %19 = vector.broadcast %17 : vector<16x1xf32> to vector<16x8xf32>
    %20 = arith.addf %18, %19 : vector<16x8xf32>
    %cst_14 = arith.constant 5.000000e-01 : f32
    %21 = vector.broadcast %cst_14 : f32 to vector<16x8xf32>
    %22 = arith.mulf %21, %20 : vector<16x8xf32>
    %23 = math.tanh %22 : vector<16x8xf32>
    %cst_15 = arith.constant 1.000000e+00 : f32
    %24 = vector.broadcast %cst_15 : f32 to vector<16x8xf32>
    %25 = arith.addf %23, %24 : vector<16x8xf32>
    %cst_16 = arith.constant 5.000000e-01 : f32
    %26 = vector.broadcast %cst_16 : f32 to vector<16x8xf32>
    %27 = arith.mulf %26, %25 : vector<16x8xf32>
    %c0_17 = arith.constant 0 : index
    %c0_18 = arith.constant 0 : index
    %28 = vector.load %arg8[%c0_17, %c0_18] : memref<16x1xf32, #tpu.memory_space<vmem>>, vector<16x1xf32>
    %c0_19 = arith.constant 0 : index
    %c0_20 = arith.constant 0 : index
    %29 = vector.load %arg9[%c0_19, %c0_20] : memref<8x4xf32, #tpu.memory_space<vmem>>, vector<8x4xf32>
    %30 = vector.broadcast %28 : vector<16x1xf32> to vector<16x8xf32>
    %31 = arith.mulf %30, %27 : vector<16x8xf32>
    %cst_21 = arith.constant dense<0.000000e+00> : vector<8xf32>
    %32 = vector.multi_reduction <add>, %31, %cst_21 [0] : vector<16x8xf32> to vector<8xf32>
    %33 = vector.shape_cast %32 : vector<8xf32> to vector<1x8xf32>
    %34 = vector.broadcast %0 : f32 to vector<1x8xf32>
    %35 = arith.addf %33, %34 : vector<1x8xf32>
    %cst_22 = arith.constant 5.000000e-01 : f32
    %36 = vector.broadcast %cst_22 : f32 to vector<1x8xf32>
    %37 = arith.mulf %36, %35 : vector<1x8xf32>
    %38 = math.tanh %37 : vector<1x8xf32>
    %cst_23 = arith.constant 1.000000e+00 : f32
    %39 = vector.broadcast %cst_23 : f32 to vector<1x8xf32>
    %40 = arith.addf %38, %39 : vector<1x8xf32>
    %cst_24 = arith.constant 5.000000e-01 : f32
    %41 = vector.broadcast %cst_24 : f32 to vector<1x8xf32>
    %42 = arith.mulf %41, %40 : vector<1x8xf32>
    %c0_25 = arith.constant 0 : index
    %c0_26 = arith.constant 0 : index
    %43 = vector.load %arg3[%c0_25, %c0_26] : memref<8x4xf32, #tpu.memory_space<vmem>>, vector<8x4xf32>
    %cst_27 = arith.constant dense<0.000000e+00> : vector<8x8xf32>
    %44 = tpu.matmul %29, %43, %cst_27 {dimension_numbers = #tpu.dot_dimension_numbers<[1], [1], [0], [0], [0, 0, 1, 0], [], []>} : vector<8x4xf32>, vector<8x4xf32>, vector<8x8xf32> -> vector<8x8xf32>
    %45 = vector.extract_strided_slice %44 {offsets = [0, 0], sizes = [1, 8], strides = [1, 1]} : vector<8x8xf32> to vector<1x8xf32>
    %46 = vector.broadcast %1 : f32 to vector<1x8xf32>
    %47 = arith.mulf %46, %42 : vector<1x8xf32>
    %48 = arith.addf %47, %45 : vector<1x8xf32>
    %49 = vector.broadcast %2 : f32 to vector<1x8xf32>
    %50 = arith.addf %48, %49 : vector<1x8xf32>
    %c0_28 = arith.constant 0 : index
    %c0_29 = arith.constant 0 : index
    %51 = vector.load %arg10[%c0_28, %c0_29] : memref<1x8xf32, #tpu.memory_space<vmem>>, vector<1x8xf32>
    tpu.vector_store %arg10[%c0_28, %c0_29], %50 {strides = array<i32>} : memref<1x8xf32, #tpu.memory_space<vmem>>, vector<1x8xf32>,
    return
  }
  func.func @transform_0(%arg0: i32) -> i32 {
    %c0_i32 = arith.constant 0 : i32
    %c0_i32_0 = arith.constant 0 : i32
    return %c0_i32 : i32
  }
  func.func @transform_1(%arg0: i32) -> (i32, i32) {
    %c0_i32 = arith.constant 0 : i32
    %c0_i32_0 = arith.constant 0 : i32
    return %arg0, %c0_i32 : i32, i32
  }
  func.func @transform_2(%arg0: i32) -> (i32, i32) {
    %c0_i32 = arith.constant 0 : i32
    %c0_i32_0 = arith.constant 0 : i32
    return %arg0, %c0_i32 : i32, i32
  }
  func.func @transform_3(%arg0: i32) -> (i32, i32) {
    %c0_i32 = arith.constant 0 : i32
    %c0_i32_0 = arith.constant 0 : i32
    %c0_i32_1 = arith.constant 0 : i32
    return %c0_i32, %c0_i32_0 : i32, i32
  }
  func.func @transform_4(%arg0: i32) -> (i32, i32) {
    %c0_i32 = arith.constant 0 : i32
    %c0_i32_0 = arith.constant 0 : i32
    %c0_i32_1 = arith.constant 0 : i32
    return %c0_i32, %c0_i32_0 : i32, i32
  }
  func.func @transform_5(%arg0: i32) -> (i32, i32) {
    %c0_i32 = arith.constant 0 : i32
    %c0_i32_0 = arith.constant 0 : i32
    %c0_i32_1 = arith.constant 0 : i32
    return %c0_i32, %c0_i32_0 : i32, i32
  }
  func.func @transform_6(%arg0: i32) -> (i32, i32) {
    %c0_i32 = arith.constant 0 : i32
    %c0_i32_0 = arith.constant 0 : i32
    %c0_i32_1 = arith.constant 0 : i32
    return %c0_i32, %c0_i32_0 : i32, i32
  }
  func.func @transform_7(%arg0: i32) -> (i32, i32) {
    %c0_i32 = arith.constant 0 : i32
    %c0_i32_0 = arith.constant 0 : i32
    %c0_i32_1 = arith.constant 0 : i32
    return %c0_i32, %c0_i32_0 : i32, i32
  }
  func.func @transform_8(%arg0: i32) -> (i32, i32) {
    %c0_i32 = arith.constant 0 : i32
    %c0_i32_0 = arith.constant 0 : i32
    %c0_i32_1 = arith.constant 0 : i32
    return %c0_i32, %c0_i32_0 : i32, i32
  }
  func.func @transform_9(%arg0: i32) -> (i32, i32) {
    %c0_i32 = arith.constant 0 : i32
    %c0_i32_0 = arith.constant 0 : i32
    return %c0_i32, %arg0 : i32, i32
  }
}

</mosaic_0001>

<bundles_post_ra>
// kernel: mlp_ann_s_forward.1
= control target key start
LH: loop header
LB: loop body
LE: loop exit
PB: predicated region body
PF: predicated region fallthrough
CT: control target
= control target key end

     0   :  { %14 = vsyncpa [#allocation4], 0  ;;  %s655_s0 = inlined_call_operand.vmem [shape: f32[3], index: 0, kind: input, shape index: {}]   ;;  %s656_s1 = inlined_call_operand.vmem [shape: f32[8,16], index: 1, kind: input, shape index: {}]   ;;  %s657_s2 = inlined_call_operand.vmem [shape: f32[8,4], index: 2, kind: input, shape index: {}]   ;;  %s658_s3 = inlined_call_operand.vmem [shape: f32[32,16], index: 3, kind: input, shape index: {}]   ;;  %s659_s4 = inlined_call_operand.vmem [shape: f32[32,1], index: 4, kind: input, shape index: {}]   ;;  %s660_s5 = inlined_call_operand.vmem [shape: f32[16,32], index: 5, kind: input, shape index: {}]   ;;  %s661_s6 = inlined_call_operand.vmem [shape: f32[16,1], index: 6, kind: input, shape index: {}]   ;;  %s662_s7 = inlined_call_operand.vmem [shape: f32[16,1], index: 7, kind: input, shape index: {}]   ;;  %s663_s8 = inlined_call_operand.vmem [shape: f32[8,4], index: 8, kind: input, shape index: {}]   ;;  %s664_s9 = inlined_call_operand.hbm [shape: f32[1,8], index: 9, kind: output, shape index: {}]  }
   0x1   :  { %15 = vsyncpa [#allocation3], 0  ;;  %s22_s11 = sshll.u32 %s655_s0, 4  ;;  %s23_s11 = int_to_ptr.vmem [resolvable:$true] %s22_s11 }
   0x2   :  { %s499_s12 = scalar_lea.vmem %s23_s11, 16  ;;  %p504_p1 = scmp.lt.s32.totalorder %s23_s11, %s23_s11 }
   0x3   :  { %p500_p0 = scmp.ne.s32.totalorder %s23_s11, %s499_s12  ;;  %p505_p2 = scmp.lt.s32.totalorder %s499_s12, %s499_s12 }
   0x5   :  { %p506_p3 = por %p505_p2, %p504_p1 }
   0x7   :  { %p507_p4 = pnand %p506_p3, %p500_p0 }
   0x9   :  { %510 = shalt.err (!%p507_p4)
}
   0xa   :  { %s535_s13 = smov [#allocation2]  }
   0xb   :  { %25 = dma.vmem_to_smem %s23_s11, 16, %s535_s13, [#allocation4]  }
   0xc   :  { %531 = dma.done.wait [#allocation4], 16  }
   0xd   :  { %532 = vsyncadd [#allocation4], 4294967280 }
   0xe   :  { %45 = sfence }
   0xf   :  { %v53_v0 = vld [vmem:[%s656_s1] sm:$0xff]  ;;  %vm78_vm0 = vcmask 130048   ;;  %v57_v2 = vld [vmem:[%s659_s4 + $0x18] sm:$0xff]  ;;  %v50_v3 = vld [vmem:[%s658_s3 + $0x8] sm:$0xff]  ;;  %v536_v4 = vmov 0   ;;  %vm209_vm1 = vcmask 261120  }
  0x10   :  { %v49_v1 = vld [vmem:[%s658_s3] sm:$0xff]  ;;  %454 = vmatprep.subr.msk.mxu0 %vm78_vm0, %v53_v0  ;;  %483 = vset.pattern.permute.xlu0 %v536_v4  ;;  %v55_v5 = vld [vmem:[%s659_s4 + $0x8] sm:$0xff]  ;;  %v51_v6 = vld [vmem:[%s658_s3 + $0x10] sm:$0xff]  ;;  %vm331_vm2 = vcmask 31744   ;;  %v537_v16 = vmov 0.0   ;;  %vm538_vm3 = vmmov 0  }
  0x11   :  { %456 = vmatprep.mubr.msk.f32.mxu0 %vm78_vm0, %v49_v1  ;;  %455 = vmatpush3.xpose.msk.msra.mxu0 %vm78_vm0, %v53_v0  ;;  %v56_v7 = vld [vmem:[%s659_s4 + $0x10] sm:$0xff]  ;;  %v54_v8 = vld [vmem:[%s659_s4] sm:$0xff]  ;;  %v52_v9 = vld [vmem:[%s658_s3 + $0x18] sm:$0xff]  ;;  %vm314_vm4 = vcmask 64512   ;;  %s430_s18 = sld [smem:[#allocation2 + $0x1]]  ;;  %s539_s20 = smov [#allocation5]  }
  0x12   :  { %75 = vperm.xlu0 %483, %v57_v2   ;;  %484 = vset.pattern.permute.xlu1 %v536_v4  ;;  %v197_v10 = vld [vmem:[%s661_s6] sm:$0xff]  ;;  %v198_v11 = vld [vmem:[%s661_s6 + $0x8] sm:$0xff]  ;;  %s431_s19 = sld [smem:[#allocation2 + $0x2]]  ;;  %s421_s1 = sshll.u32 %s539_s20, 4  ;;  %vm413_vm5 = vcmask 57344   ;;  %s422_s1 = int_to_ptr.vmem [resolvable:$true] %s421_s1 }
  0x13   :  { %65 = vperm.xlu1 %484, %v55_v5   ;;  %v299_v12 = vld [vmem:[%s662_s7] sm:$0xff]  ;;  %v300_v13 = vld [vmem:[%s662_s7 + $0x8] sm:$0xff]  ;;  %473 = vmatprep.subr.mxu0 %v537_v16  ;;  %s511_s21 = scalar_lea.vmem %s422_s1, 16  ;;  %s515_s22 = scalar_lea.vmem %s422_s1, 32 }
  0x14   :  { %457 = vmatmul.mubr.msk.f32.vlgmr.msra.gmra.mxu0 %vm78_vm0, %v50_v3  ;;  %v195_v14 = vld [vmem:[%s660_s5] sm:$0xff]  ;;  %v196_v46 = vld [vmem:[%s660_s5 + $0x8] sm:$0xff]  ;;  %s46_s5 = sld [smem:[#allocation2]]  ;;  %p512_p5 = scmp.ne.s32.totalorder %s422_s1, %s511_s21 }
  0x15   :  { %459 = vmatprep.mubr.msk.f32.mxu0 %vm78_vm0, %v51_v6  ;;  %470 = vmatprep.mubr.msk.f32.mxu1 %vm209_vm1, %v195_v14  ;;  %v330_v15 = vld [vmem:[%s657_s2] sm:$0xff]  ;;  %p516_p6 = scmp.lt.s32.totalorder %s422_s1, %s422_s1  ;;  %p517_p7 = scmp.lt.s32.totalorder %s515_s22, %s511_s21 }
  0x16   :  { %70 = vperm.xlu0 %483, %v56_v7   ;;  %474 = vmatpush3.xpose.msk.msra.mxu0 %vm331_vm2, %v330_v15  ;;  %v301_v17 = vld [vmem:[%s663_s8] sm:$0xff] }
  0x17   :  { %60 = vperm.xlu1 %484, %v54_v8   ;;  %p518_p8 = por %p517_p7, %p516_p6 }
  0x18   :  { %460 = vmatmul.mubr.msk.f32.gmra.mxu0 %vm78_vm0, %v52_v9 }
  0x19   :  { %475 = vmatprep.mubr.msk.f32.mxu0 %vm538_vm3, %v537_v16  ;;  %p519_p9 = pnand %p518_p8, %p512_p5 }
  0x1a   :  { %201 = vperm.xlu0 %483, %v197_v10  }
  0x1b   :  { %206 = vperm.xlu1 %484, %v198_v11   ;;  %v324_v11 = vstv %s46_s5 }
  0x1c   :  { %476 = vmatmul.mubr.msk.f32.vlgmr.msra.gmra.mxu0 %vm331_vm2, %v301_v17  ;;  %v408_v17 = vstv %s430_s18 }
  0x1e   :  { %304 = vperm.xlu0 %483, %v299_v12  }
  0x1f   :  { %309 = vperm.xlu1 %484, %v300_v13  }
  0x8d   :  { %v76_v19 = vpop.permute.xlu0 %75 }
  0x8e   :  { %v66_v18 = vpop.permute.xlu1 %65 }
  0x91   :  { %v71_v28 = vpop.permute.xlu0 %70 }
  0x92   :  { %v61_v22 = vpop.permute.xlu1 %60 }
  0x95   :  { %v202_v52 = vpop.permute.xlu0 %201 }
  0x96   :  { %v207_v49 = vpop.permute.xlu1 %206 }
  0x99   :  { %v305_v1 = vpop.permute.xlu0 %304 }
  0x9a   :  { %v310_v62 = vpop.permute.xlu1 %309 }
  0xd4   :  { %v458_v20 = vpop.f32.mrf.mxu0 }
  0xd5   :  { %v166_v21 = vadd.f32 %v458_v20, %v66_v18  ;;  %v411_v20 = vstv %s431_s19 }
  0xd6   :  { %v160_v23 = vpop.f32.mrf.mxu0 }
  0xd7   :  { %v161_v24 = vadd.f32 %v160_v23, %v61_v22  ;;  %v180_v25 = vmul.f32 0.5, %v166_v21 }
  0xd8   :  { %v461_v26 = vpop.f32.mrf.mxu0 }
  0xd9   :  { %v176_v27 = vadd.f32 %v461_v26, %v76_v19  ;;  %v179_v29 = vmul.f32 0.5, %v161_v24  ;;  %485 = vtanh.f32 %v180_v25 }
  0xda   :  { %v170_v30 = vpop.f32.mrf.mxu0 }
  0xdb   :  { %v182_v31 = vmul.f32 0.5, %v176_v27  ;;  %v171_v32 = vadd.f32 %v170_v30, %v71_v28 }
  0xdc   :  { %v404_v47 = vpop.f32.mrf.mxu0 }
  0xdd   :  { %487 = vtanh.f32 %v182_v31  ;;  %v181_v33 = vmul.f32 0.5, %v171_v32 }
  0xde   :  { %489 = vtanh.f32 %v179_v29  ;;  %v477_v48 = vpop.f32.mrf.mxu0 }
  0xdf   :  { %491 = vtanh.f32 %v181_v33 }
  0xe6   :  { %v486_v34 = vpop.eup %485 }
  0xe7   :  { %v188_v41 = vadd.f32 1.0, %v486_v34 }
  0xe9   :  { %v192_v44 = vmul.f32 0.5, %v188_v41 }
  0xea   :  { %v488_v35 = vpop.eup %487 }
  0xeb   :  { %v490_v36 = vpop.eup %489  ;;  %v190_v37 = vadd.f32 1.0, %v488_v35 }
  0xec   :  { %v492_v38 = vpop.eup %491  ;;  %v187_v43 = vadd.f32 1.0, %v490_v36 }
  0xed   :  { %v194_v39 = vmul.f32 0.5, %v190_v37  ;;  %v189_v40 = vadd.f32 1.0, %v492_v38 }
  0xee   :  { %v191_v45 = vmul.f32 0.5, %v187_v43 }
  0xef   :  { %462 = vmatprep.subr.mxu1 %v194_v39  ;;  %v193_v42 = vmul.f32 0.5, %v189_v40 }
  0xf0   :  { %463 = vmatpush3.msra.mxu1 %v194_v39 }
  0xf1   :  { %464 = vmatprep.subr.mxu1 %v193_v42 }
  0xf2   :  { %465 = vmatpush3.msra.mxu1 %v193_v42 }
  0xf3   :  { %466 = vmatprep.subr.mxu1 %v192_v44 }
  0xf4   :  { %467 = vmatpush3.msra.mxu1 %v192_v44 }
  0xf5   :  { %468 = vmatprep.subr.mxu1 %v191_v45 }
  0xf6   :  { %469 = vmatpush3.msra.mxu1 %v191_v45 }
  0xf7   :  { %471 = vmatmul.mubr.msk.f32.vlgmr.msra.gmra.mxu1 %vm209_vm1, %v196_v46 }
 0x1b7   :  { %v472_v50 = vpop.f32.mrf.mxu1 }
 0x1b8   :  { %v288_v51 = vadd.f32 %v472_v50, %v207_v49 }
 0x1b9   :  { %v282_v53 = vpop.f32.mrf.mxu1 }
 0x1ba   :  { %v292_v54 = vmul.f32 0.5, %v288_v51  ;;  %v283_v55 = vadd.f32 %v282_v53, %v202_v52 }
 0x1bc   :  { %493 = vtanh.f32 %v292_v54  ;;  %v291_v56 = vmul.f32 0.5, %v283_v55 }
 0x1be   :  { %495 = vtanh.f32 %v291_v56 }
 0x1c9   :  { %v494_v57 = vpop.eup %493 }
 0x1ca   :  { %v296_v58 = vadd.f32 1.0, %v494_v57 }
 0x1cb   :  { %v496_v59 = vpop.eup %495 }
 0x1cc   :  { %v298_v60 = vmul.f32 0.5, %v296_v58  ;;  %v295_v61 = vadd.f32 1.0, %v496_v59 }
 0x1ce   :  { %v313_v63 = vmul.f32 %v310_v62, %v298_v60  ;;  %v297_v0 = vmul.f32 0.5, %v295_v61 }
 0x1d0   :  { %v312_v2 = vmul.f32 %v305_v1, %v297_v0  ;;  %v316_v3 = vsel %vm314_vm4, %v313_v63, 0.0 }
 0x1d2   :  { %v315_v4 = vsel %vm314_vm4, %v312_v2, 0.0 }
 0x1d3   :  { %v317_v5 = vadd.f32 %v316_v3, %v315_v4 }
 0x1d5   :  { %v318_v6 = vrot.slane %v317_v5, 4 }
 0x1d7   :  { %v319_v7 = vadd.f32 %v318_v6, %v317_v5 }
 0x1d9   :  { %v320_v8 = vrot.slane %v319_v7, 2 }
 0x1db   :  { %v321_v9 = vadd.f32 %v320_v8, %v319_v7 }
 0x1dd   :  { %v322_v10 = vrot.slane %v321_v9, 1 }
 0x1df   :  { %v323_v12 = vadd.f32 %v322_v10, %v321_v9 }
 0x1e1   :  { %v325_v13 = vadd.f32 %v324_v11, %v323_v12 }
 0x1e3   :  { %v326_v14 = vmul.f32 0.5, %v325_v13 }
 0x1e5   :  { %497 = vtanh.f32 %v326_v14 }
 0x1f2   :  { %v498_v15 = vpop.eup %497 }
 0x1f3   :  { %v328_v16 = vadd.f32 1.0, %v498_v15 }
 0x1f5   :  { %v329_v18 = vmul.f32 0.5, %v328_v16 }
 0x1f7   :  { %v409_v19 = vmul.f32 %v408_v17, %v329_v18 }
 0x1f9   :  { %v410_v21 = vadd.f32 %v409_v19, %v404_v47 }
 0x1fb   :  { %v412_v22 = vadd.f32 %v411_v20, %v410_v21 }
 0x1fd   :  { %414 = vst.msk [vmem:[#allocation5] sm:$0x1] %vm413_vm5, %v412_v22 }
 0x1fe   :  { %522 = shalt.err (!%p519_p9)
}
 0x1ff   :  { %424 = dma.vmem_to_hbm [thread:$0]  %s422_s1, 16, %s664_s9, [#allocation3]  }
 0x200   :  { %533 = dma.done.wait [#allocation3], 16  }
 0x201   :  { %534 = vsyncadd [#allocation3], 4294967280 }
 0x202   :  { %428 = vsyncpa [#allocation3], 1 }
 0x203   :  { %429 = vsyncpa [#allocation4], 1 }

</bundles_post_ra>
